<compile_context>
chip_gen: v5e
topology: v5e:2x2
jax: 0.10.0
libtpu: 0.0.40
codegen_flags: <defaults>
</compile_context>

<pallas_src>
import jax
import jax.numpy as jnp
from jax import lax
from jax.experimental import pallas as pl
from jax.experimental.pallas import tpu as pltpu


def _round_up(a: int, b: int) -> int:
    return (a + b - 1) // b * b


def _largest_aligned_divisor(padded: int, align: int, cap: int) -> int:
    """Largest multiple of `align` that divides `padded` and is <= cap.

    `padded` is assumed to be a multiple of `align`, so `align` always works.
    """
    t = min(cap, padded)
    t = (t // align) * align
    while t > align:
        if padded % t == 0:
            return t
        t -= align
    return align


def _proj_kernel(x_ref, w_ref, b_ref, o_ref, acc_ref):
    # x_ref:   (tm, tk)  activation tile
    # w_ref:   (tn, tk)  weight tile in PyTorch (N, K) layout
    # b_ref:   (1,  tn)  bias tile for this N block
    # o_ref:   (tm, tn)  output tile
    # acc_ref: (tm, tn)  f32 accumulator, resident across the K grid axis
    k = pl.program_id(2)

    @pl.when(k == 0)
    def _init():
        # Fold the bias add into the accumulator init.
        acc_ref[...] = jnp.broadcast_to(
            b_ref[...].astype(jnp.float32), acc_ref.shape
        )

    # (tm, tk) x (tn, tk) contracted on K  ->  (tm, tn), f32 accumulation.
    acc_ref[...] += lax.dot_general(
        x_ref[...],
        w_ref[...],
        dimension_numbers=(((1,), (1,)), ((), ())),
        preferred_element_type=jnp.float32,
    )

    @pl.when(k == pl.num_programs(2) - 1)
    def _finalize():
        o_ref[...] = acc_ref[...].astype(o_ref.dtype)


# Below this many MACs, kernel-launch/per-step overhead dwarfs the math.
_TINY_PROBLEM_MACS = 1 << 16


def projection_layer(x, weight, bias):
    """Equivalent of torch.nn.Linear(input_dim, output_dim)(x).

    x:      (..., input_dim) float32
    weight: (output_dim, input_dim) float32   (PyTorch layout, used as-is)
    bias:   (output_dim,) float32
    returns (..., output_dim) float32
    """
    n_out, k_in = weight.shape
    assert x.shape[-1] == k_in

    lead_shape = x.shape[:-1]
    x2d = x.reshape(-1, k_in)  # (M, K)
    m = x2d.shape[0]

    # Tiny shapes: plain XLA path is strictly faster than a pallas_call.
    if m * k_in * n_out < _TINY_PROBLEM_MACS:
        out2d = (x2d @ weight.T + bias).astype(x.dtype)
        return out2d.reshape(*lead_shape, n_out)

    # ---- tile selection (MXU / lane aligned, modest VMEM footprint) -------
    # M: sublane-aligned; pad rows to a tile multiple (cheap, sliced off).
    tm = 256 if m >= 256 else _round_up(m, 8)
    m_pad = _round_up(m, tm)

    # N: lane-aligned divisor of the 128-padded output dim -> lane-dense
    # stores, no extra N padding beyond 128-alignment.
    n_pad = _round_up(n_out, 128)
    tn = _largest_aligned_divisor(n_pad, 128, 256)

    # K: 128-aligned divisor of the 128-padded contraction dim -> no wasted
    # MXU work, and x/W are only padded when K itself is not 128-aligned
    # (the zero padding contributes 0 to the accumulation).
    k_pad = _round_up(k_in, 128)
    tk = _largest_aligned_divisor(k_pad, 128, 1024)

    # ---- zero padding --------------------------------------------------
    if m_pad != m or k_pad != k_in:
        x2d = jnp.pad(x2d, ((0, m_pad - m), (0, k_pad - k_in)))
    w2d = weight
    if n_pad != n_out or k_pad != k_in:
        w2d = jnp.pad(w2d, ((0, n_pad - n_out), (0, k_pad - k_in)))
    b2d = bias.reshape(1, n_out)
    if n_pad != n_out:
        b2d = jnp.pad(b2d, ((0, 0), (0, n_pad - n_out)))

    grid = (m_pad // tm, n_pad // tn, k_pad // tk)

    cost = pl.CostEstimate(
        flops=2 * m_pad * k_pad * n_pad,
        transcendentals=0,
        bytes_accessed=4 * (m_pad * k_pad + k_pad * n_pad + m_pad * n_pad),
    )

    out2d = pl.pallas_call(
        _proj_kernel,
        out_shape=jax.ShapeDtypeStruct((m_pad, n_pad), x.dtype),
        grid_spec=pltpu.PrefetchScalarGridSpec(
            num_scalar_prefetch=0,
            grid=grid,
            in_specs=[
                pl.BlockSpec((tm, tk), lambda i, j, k: (i, k)),   # x tile
                pl.BlockSpec((tn, tk), lambda i, j, k: (j, k)),   # W tile (N,K)
                pl.BlockSpec((1, tn), lambda i, j, k: (0, j)),    # bias tile
            ],
            out_specs=pl.BlockSpec((tm, tn), lambda i, j, k: (i, j)),
            scratch_shapes=[pltpu.VMEM((tm, tn), jnp.float32)],
        ),
        compiler_params=pltpu.CompilerParams(
            dimension_semantics=("parallel", "parallel", "arbitrary"),
        ),
        cost_estimate=cost,
    )(x2d, w2d, b2d)

    # Slice off M / N padding and restore leading batch dims.
    out2d = out2d[:m, :n_out]
    return out2d.reshape(*lead_shape, n_out)


def _make_linear_params(key, input_dim, output_dim):
    # Deterministic init mimicking PyTorch Linear default
    # (uniform in [-1/sqrt(in_dim), 1/sqrt(in_dim)]).
    kw, kb = jax.random.split(key)
    bound = 1.0 / jnp.sqrt(jnp.float32(input_dim))
    weight = jax.random.uniform(
        kw, (output_dim, input_dim), jnp.float32, -bound, bound
    )
    bias = jax.random.uniform(kb, (output_dim,), jnp.float32, -bound, bound)
    return weight, bias


def _check_case(key, batch_shape, input_dim, output_dim):
    kx, kp = jax.random.split(key)
    weight, bias = _make_linear_params(kp, input_dim, output_dim)
    x = jax.random.normal(kx, (*batch_shape, input_dim), dtype=jnp.float32)

    y = projection_layer(x, weight, bias)
    y = jax.block_until_ready(y)

    # High-precision reference of the same math.
    x2 = x.reshape(-1, input_dim)
    y_ref = (
        jnp.einsum("mk,nk->mn", x2, weight, precision=lax.Precision.HIGHEST)
        + bias
    ).reshape(*batch_shape, output_dim)

    assert y.shape == (*batch_shape, output_dim)
    assert jnp.allclose(y, y_ref, atol=2e-2, rtol=2e-2), (
        float(jnp.max(jnp.abs(y - y_ref)))
    )


if __name__ == "__main__":
    key = jax.random.PRNGKey(0)
    k1, k2 = jax.random.split(key)

    # Case 1: exercises N padding (80 -> 128) and a single-step K grid.
    _check_case(k1, batch_shape=(2, 4, 24), input_dim=768, output_dim=80)

    # Case 2: exercises the K accumulation loop (K=2304 -> tk=768, 3 steps)
    # and a full 256-wide N tile.
    _check_case(k2, batch_shape=(8, 8), input_dim=2304, output_dim=200)

    print("KERNEL_OK")
</pallas_src>

<mosaic_0001>
module attributes {stable_mosaic.version = 11 : i64} {
  func.func @_proj_kernel(%arg0: i32, %arg1: i32, %arg2: i32, %arg3: memref<192x768xf32, #tpu.memory_space<vmem>>, %arg4: memref<128x768xf32, #tpu.memory_space<vmem>>, %arg5: memref<1x128xf32, #tpu.memory_space<vmem>>, %arg6: memref<192x128xf32, #tpu.memory_space<vmem>>, %arg7: memref<192x128xf32, #tpu.memory_space<vmem>>) attributes {dimension_semantics = [#tpu.dimension_semantics<parallel>, #tpu.dimension_semantics<parallel>, #tpu.dimension_semantics<arbitrary>], iteration_bounds = array<i64: 1, 1, 1>, scalar_prefetch = 0 : i64, scratch_operands = 1 : i64, tpu.core_type = #tpu.core_type<tc>, window_params = [{transform_indices = @transform_0, window_bounds = array<i64: 192, 768>}, {transform_indices = @transform_1, window_bounds = array<i64: 128, 768>}, {transform_indices = @transform_2, window_bounds = array<i64: 1, 128>}, {transform_indices = @transform_3, window_bounds = array<i64: 192, 128>}]} {
    %c0_i32 = arith.constant 0 : i32
    %0 = arith.cmpi eq, %arg2, %c0_i32 : i32
    %1 = arith.extui %0 : i1 to i32
    %c0_i32_0 = arith.constant 0 : i32
    %2 = arith.cmpi ne, %1, %c0_i32_0 : i32
    scf.if %2 {
      %c0_10 = arith.constant 0 : index
      %c0_11 = arith.constant 0 : index
      %12 = vector.load %arg5[%c0_10, %c0_11] : memref<1x128xf32, #tpu.memory_space<vmem>>, vector<1x128xf32>
      %13 = vector.shape_cast %12 : vector<1x128xf32> to vector<1x128xf32>
      %14 = vector.broadcast %13 : vector<1x128xf32> to vector<192x128xf32>
      %c0_12 = arith.constant 0 : index
      %c0_13 = arith.constant 0 : index
      %15 = vector.load %arg7[%c0_12, %c0_13] : memref<192x128xf32, #tpu.memory_space<vmem>>, vector<192x128xf32>
      tpu.vector_store %arg7[%c0_12, %c0_13], %14 {strides = array<i32>} : memref<192x128xf32, #tpu.memory_space<vmem>>, vector<192x128xf32>,
    } else {
    }
    %c0 = arith.constant 0 : index
    %c0_1 = arith.constant 0 : index
    %3 = vector.load %arg7[%c0, %c0_1] : memref<192x128xf32, #tpu.memory_space<vmem>>, vector<192x128xf32>
    %c0_2 = arith.constant 0 : index
    %c0_3 = arith.constant 0 : index
    %4 = vector.load %arg3[%c0_2, %c0_3] : memref<192x768xf32, #tpu.memory_space<vmem>>, vector<192x768xf32>
    %c0_4 = arith.constant 0 : index
    %c0_5 = arith.constant 0 : index
    %5 = vector.load %arg4[%c0_4, %c0_5] : memref<128x768xf32, #tpu.memory_space<vmem>>, vector<128x768xf32>
    %cst = arith.constant dense<0.000000e+00> : vector<192x128xf32>
    %6 = tpu.matmul %4, %5, %cst {dimension_numbers = #tpu.dot_dimension_numbers<[1], [1], [0], [0], [0, 0, 1, 0], [], []>} : vector<192x768xf32>, vector<128x768xf32>, vector<192x128xf32> -> vector<192x128xf32>
    %7 = arith.addf %3, %6 : vector<192x128xf32>
    %c0_6 = arith.constant 0 : index
    %c0_7 = arith.constant 0 : index
    %8 = vector.load %arg7[%c0_6, %c0_7] : memref<192x128xf32, #tpu.memory_space<vmem>>, vector<192x128xf32>
    tpu.vector_store %arg7[%c0_6, %c0_7], %7 {strides = array<i32>} : memref<192x128xf32, #tpu.memory_space<vmem>>, vector<192x128xf32>,
    %c0_i32_8 = arith.constant 0 : i32
    %9 = arith.cmpi eq, %arg2, %c0_i32_8 : i32
    %10 = arith.extui %9 : i1 to i32
    %c0_i32_9 = arith.constant 0 : i32
    %11 = arith.cmpi ne, %10, %c0_i32_9 : i32
    scf.if %11 {
      %c0_10 = arith.constant 0 : index
      %c0_11 = arith.constant 0 : index
      %12 = vector.load %arg7[%c0_10, %c0_11] : memref<192x128xf32, #tpu.memory_space<vmem>>, vector<192x128xf32>
      %c0_12 = arith.constant 0 : index
      %c0_13 = arith.constant 0 : index
      %13 = vector.load %arg6[%c0_12, %c0_13] : memref<192x128xf32, #tpu.memory_space<vmem>>, vector<192x128xf32>
      tpu.vector_store %arg6[%c0_12, %c0_13], %12 {strides = array<i32>} : memref<192x128xf32, #tpu.memory_space<vmem>>, vector<192x128xf32>,
    } else {
    }
    return
  }
  func.func @transform_0(%arg0: i32, %arg1: i32, %arg2: i32) -> (i32, i32) {
    %c0_i32 = arith.constant 0 : i32
    return %arg0, %arg2 : i32, i32
  }
  func.func @transform_1(%arg0: i32, %arg1: i32, %arg2: i32) -> (i32, i32) {
    %c0_i32 = arith.constant 0 : i32
    return %arg1, %arg2 : i32, i32
  }
  func.func @transform_2(%arg0: i32, %arg1: i32, %arg2: i32) -> (i32, i32) {
    %c0_i32 = arith.constant 0 : i32
    %c0_i32_0 = arith.constant 0 : i32
    return %c0_i32, %arg1 : i32, i32
  }
  func.func @transform_3(%arg0: i32, %arg1: i32, %arg2: i32) -> (i32, i32) {
    %c0_i32 = arith.constant 0 : i32
    return %arg0, %arg1 : i32, i32
  }
}

</mosaic_0001>

<bundles_post_ra>
// kernel: tpu_custom_call.1
= control target key start
LH: loop header
LB: loop body
LE: loop exit
PB: predicated region body
PF: predicated region fallthrough
CT: control target
= control target key end

     0   :  { %8 = vsyncpa [#allocation4], 0  ;;  %s1287_s0 = inlined_call_operand.hbm [shape: f32[192,768], index: 0, kind: input, shape index: {}]   ;;  %s1288_s1 = inlined_call_operand.hbm [shape: f32[128,768], index: 1, kind: input, shape index: {}]   ;;  %s1289_s2 = inlined_call_operand.vmem [shape: f32[1,128], index: 2, kind: input, shape index: {}]   ;;  %s1290_s3 = inlined_call_operand.hbm [shape: f32[192,128], index: 3, kind: output, shape index: {}]  }
   0x1   :  { %9 = vsyncpa [#allocation7], 0 }
   0x2   :  { %10 = vsyncpa [#allocation5], 0  ;;  %s15_s14 = sshll.u32 %s1287_s0, 4  ;;  %s1114_s15 = smov [#allocation3]   ;;  %s16_s14 = int_to_ptr.hbm [resolvable:$true] %s15_s14 }
   0x3   :  { %s17_s16 = sshll.u32 %s1114_s15, 4  ;;  %s28_s19 = sshll.u32 %s1288_s1, 4  ;;  %s18_s16 = int_to_ptr.vmem [resolvable:$true] %s17_s16  ;;  %s29_s19 = int_to_ptr.hbm [resolvable:$true] %s28_s19 }
   0x4   :  { %s1115_s20 = smov 768   ;;  %s1116_s21 = smov 48  }
   0x5   :  { %23 = dma.hbm_to_vmem [thread:$0]  %s16_s14, 18432, %s18_s16, [#allocation4], %s1115_s20, %s1115_s20, %s1116_s21  }
   0x6   :  { %s1117_s22 = smov [#allocation6]  }
   0x7   :  { %s30_s23 = sshll.u32 %s1117_s22, 4  ;;  %s31_s23 = int_to_ptr.vmem [resolvable:$true] %s30_s23 }
   0x8   :  { %36 = dma.hbm_to_vmem [thread:$0]  %s29_s19, 12288, %s31_s23, [#allocation7], %s1115_s20, %s1115_s20, %s1116_s21  }
   0x9   :  { %1108 = dma.done.wait [#allocation4], 18432  }
   0xa   :  { %1109 = vsyncadd [#allocation4], 4294948864 }
   0xb   :  { %1110 = dma.done.wait [#allocation7], 12288  }
   0xc   :  { %1111 = vsyncadd [#allocation7], 4294955008  ;;  %v337_v0 = vld [vmem:[#allocation6 + $0x2d0] sm:$0xff]  ;;  %v338_v1 = vld [vmem:[#allocation6 + $0x2d8] sm:$0xff]  ;;  %s982_s27 = sshll.u32 %s1290_s3, 4  ;;  %s1119_s28 = smov 128   ;;  %s983_s27 = int_to_ptr.hbm [resolvable:$true] %s982_s27 }
   0xd   :  { %996 = vmatpush.xpose.msra.mxu2 %v337_v0  ;;  %1012 = vmatpush.xpose.msra.mxu3 %v338_v1  ;;  %v331_v2 = vld [vmem:[#allocation6 + $0x2a0] sm:$0xff]  ;;  %v332_v3 = vld [vmem:[#allocation6 + $0x2a8] sm:$0xff]  ;;  %v325_v4 = vld [vmem:[#allocation6 + $0x270] sm:$0xff]  ;;  %s1120_s29 = smov 8  }
   0xe   :  { %343 = vmatpush.xpose.msra.mxu0 %v337_v0  ;;  %432 = vmatpush.xpose.msra.mxu1 %v338_v1  ;;  %v326_v5 = vld [vmem:[#allocation6 + $0x278] sm:$0xff]  ;;  %v319_v6 = vld [vmem:[#allocation6 + $0x240] sm:$0xff]  ;;  %v320_v7 = vld [vmem:[#allocation6 + $0x248] sm:$0xff] }
   0xf   :  { %v313_v8 = vld [vmem:[#allocation6 + $0x210] sm:$0xff]  ;;  %v314_v9 = vld [vmem:[#allocation6 + $0x218] sm:$0xff]  ;;  %v307_v10 = vld [vmem:[#allocation6 + $0x1e0] sm:$0xff] }
  0x10   :  { %v308_v11 = vld [vmem:[#allocation6 + $0x1e8] sm:$0xff]  ;;  %v301_v12 = vld [vmem:[#allocation6 + $0x1b0] sm:$0xff]  ;;  %v302_v13 = vld [vmem:[#allocation6 + $0x1b8] sm:$0xff] }
  0x11   :  { %997 = vmatpush.xpose.msra.mxu2 %v331_v2  ;;  %1013 = vmatpush.xpose.msra.mxu3 %v332_v3  ;;  %v295_v14 = vld [vmem:[#allocation6 + $0x180] sm:$0xff]  ;;  %v296_v15 = vld [vmem:[#allocation6 + $0x188] sm:$0xff]  ;;  %v289_v16 = vld [vmem:[#allocation6 + $0x150] sm:$0xff] }
  0x12   :  { %344 = vmatpush.xpose.msra.mxu0 %v331_v2  ;;  %433 = vmatpush.xpose.msra.mxu1 %v332_v3  ;;  %v290_v17 = vld [vmem:[#allocation6 + $0x158] sm:$0xff]  ;;  %v283_v18 = vld [vmem:[#allocation6 + $0x120] sm:$0xff]  ;;  %v284_v19 = vld [vmem:[#allocation6 + $0x128] sm:$0xff] }
  0x13   :  { %v277_v20 = vld [vmem:[#allocation6 + $0xf0] sm:$0xff]  ;;  %v278_v21 = vld [vmem:[#allocation6 + $0xf8] sm:$0xff]  ;;  %v271_v22 = vld [vmem:[#allocation6 + $0xc0] sm:$0xff] }
  0x14   :  { %v272_v23 = vld [vmem:[#allocation6 + $0xc8] sm:$0xff]  ;;  %v265_v24 = vld [vmem:[#allocation6 + $0x90] sm:$0xff]  ;;  %v266_v25 = vld [vmem:[#allocation6 + $0x98] sm:$0xff] }
  0x15   :  { %998 = vmatpush.xpose.msra.mxu2 %v325_v4  ;;  %1014 = vmatpush.xpose.msra.mxu3 %v326_v5  ;;  %v259_v26 = vld [vmem:[#allocation6 + $0x60] sm:$0xff]  ;;  %v260_v27 = vld [vmem:[#allocation6 + $0x68] sm:$0xff]  ;;  %v253_v28 = vld [vmem:[#allocation6 + $0x30] sm:$0xff] }
  0x16   :  { %345 = vmatpush.xpose.msra.mxu0 %v325_v4  ;;  %434 = vmatpush.xpose.msra.mxu1 %v326_v5  ;;  %v254_v29 = vld [vmem:[#allocation6 + $0x38] sm:$0xff]  ;;  %v247_v30 = vld [vmem:[#allocation6] sm:$0xff]  ;;  %v248_v31 = vld [vmem:[#allocation6 + $0x8] sm:$0xff] }
  0x17   :  { %v339_v32 = vld [vmem:[#allocation6 + $0x2e0] sm:$0xff]  ;;  %v340_v33 = vld [vmem:[#allocation6 + $0x2e8] sm:$0xff]  ;;  %v341_v36 = vld [vmem:[#allocation6 + $0x2f0] sm:$0xff] }
  0x18   :  { %v175_v34 = vld [vmem:[#allocation3 + $0x240] sm:$0xff]  ;;  %v176_v35 = vld [vmem:[#allocation3 + $0x248] sm:$0xff]  ;;  %v342_v37 = vld [vmem:[#allocation6 + $0x2f8] sm:$0xff] }
  0x19   :  { %999 = vmatpush.xpose.msra.mxu2 %v319_v6  ;;  %1015 = vmatpush.xpose.msra.mxu3 %v320_v7  ;;  %v333_v38 = vld [vmem:[#allocation6 + $0x2b0] sm:$0xff]  ;;  %v334_v39 = vld [vmem:[#allocation6 + $0x2b8] sm:$0xff]  ;;  %v103_v40 = vld [vmem:[#allocation3] sm:$0xff] }
  0x1a   :  { %346 = vmatpush.xpose.msra.mxu0 %v319_v6  ;;  %435 = vmatpush.xpose.msra.mxu1 %v320_v7  ;;  %v104_v41 = vld [vmem:[#allocation3 + $0x8] sm:$0xff]  ;;  %v335_v42 = vld [vmem:[#allocation6 + $0x2c0] sm:$0xff]  ;;  %v181_v46 = vld [vmem:[#allocation3 + $0x270] sm:$0xff] }
  0x1b   :  { %v336_v43 = vld [vmem:[#allocation6 + $0x2c8] sm:$0xff]  ;;  %v327_v44 = vld [vmem:[#allocation6 + $0x280] sm:$0xff]  ;;  %v182_v47 = vld [vmem:[#allocation3 + $0x278] sm:$0xff] }
  0x1c   :  { %v328_v45 = vld [vmem:[#allocation6 + $0x288] sm:$0xff]  ;;  %v329_v48 = vld [vmem:[#allocation6 + $0x290] sm:$0xff]  ;;  %v330_v49 = vld [vmem:[#allocation6 + $0x298] sm:$0xff] }
  0x1d   :  { %1000 = vmatpush.xpose.msra.mxu2 %v313_v8  ;;  %1016 = vmatpush.xpose.msra.mxu3 %v314_v9  ;;  %v321_v50 = vld [vmem:[#allocation6 + $0x250] sm:$0xff]  ;;  %v322_v51 = vld [vmem:[#allocation6 + $0x258] sm:$0xff]  ;;  %v323_v54 = vld [vmem:[#allocation6 + $0x260] sm:$0xff] }
  0x1e   :  { %347 = vmatpush.xpose.msra.mxu0 %v313_v8  ;;  %436 = vmatpush.xpose.msra.mxu1 %v314_v9  ;;  %v109_v52 = vld [vmem:[#allocation3 + $0x30] sm:$0xff]  ;;  %v110_v53 = vld [vmem:[#allocation3 + $0x38] sm:$0xff]  ;;  %v324_v55 = vld [vmem:[#allocation6 + $0x268] sm:$0xff] }
  0x1f   :  { %v315_v56 = vld [vmem:[#allocation6 + $0x220] sm:$0xff]  ;;  %v316_v57 = vld [vmem:[#allocation6 + $0x228] sm:$0xff]  ;;  %v317_v60 = vld [vmem:[#allocation6 + $0x230] sm:$0xff] }
  0x20   :  { %v187_v58 = vld [vmem:[#allocation3 + $0x2a0] sm:$0xff]  ;;  %v188_v59 = vld [vmem:[#allocation3 + $0x2a8] sm:$0xff]  ;;  %v318_v61 = vld [vmem:[#allocation6 + $0x238] sm:$0xff] }
  0x21   :  { %1001 = vmatpush.xpose.msra.mxu2 %v307_v10  ;;  %1017 = vmatpush.xpose.msra.mxu3 %v308_v11  ;;  %v309_v62 = vld [vmem:[#allocation6 + $0x1f0] sm:$0xff]  ;;  %v310_v63 = vld [vmem:[#allocation6 + $0x1f8] sm:$0xff]  ;;  %v115_v0 = vld [vmem:[#allocation3 + $0x60] sm:$0xff] }
  0x22   :  { %348 = vmatpush.xpose.msra.mxu0 %v307_v10  ;;  %437 = vmatpush.xpose.msra.mxu1 %v308_v11  ;;  %v116_v1 = vld [vmem:[#allocation3 + $0x68] sm:$0xff]  ;;  %v311_v2 = vld [vmem:[#allocation6 + $0x200] sm:$0xff]  ;;  %v193_v6 = vld [vmem:[#allocation3 + $0x2d0] sm:$0xff] }
  0x23   :  { %v312_v3 = vld [vmem:[#allocation6 + $0x208] sm:$0xff]  ;;  %v303_v4 = vld [vmem:[#allocation6 + $0x1c0] sm:$0xff]  ;;  %v194_v7 = vld [vmem:[#allocation3 + $0x2d8] sm:$0xff] }
  0x24   :  { %v304_v5 = vld [vmem:[#allocation6 + $0x1c8] sm:$0xff]  ;;  %v305_v8 = vld [vmem:[#allocation6 + $0x1d0] sm:$0xff]  ;;  %v306_v9 = vld [vmem:[#allocation6 + $0x1d8] sm:$0xff] }
  0x25   :  { %1002 = vmatpush.xpose.msra.mxu2 %v301_v12  ;;  %1018 = vmatpush.xpose.msra.mxu3 %v302_v13  ;;  %v297_v10 = vld [vmem:[#allocation6 + $0x190] sm:$0xff]  ;;  %v298_v11 = vld [vmem:[#allocation6 + $0x198] sm:$0xff] }
  0x26   :  { %349 = vmatpush.xpose.msra.mxu0 %v301_v12  ;;  %438 = vmatpush.xpose.msra.mxu1 %v302_v13  ;;  %v121_v12 = vld [vmem:[#allocation3 + $0x90] sm:$0xff]  ;;  %v122_v13 = vld [vmem:[#allocation3 + $0x98] sm:$0xff] }
  0x29   :  { %1003 = vmatpush.xpose.msra.mxu2 %v295_v14  ;;  %1019 = vmatpush.xpose.msra.mxu3 %v296_v15 }
  0x2a   :  { %350 = vmatpush.xpose.msra.mxu0 %v295_v14  ;;  %439 = vmatpush.xpose.msra.mxu1 %v296_v15  ;;  %v299_v14 = vld [vmem:[#allocation6 + $0x1a0] sm:$0xff]  ;;  %v300_v15 = vld [vmem:[#allocation6 + $0x1a8] sm:$0xff] }
  0x2d   :  { %1004 = vmatpush.xpose.msra.mxu2 %v289_v16  ;;  %1020 = vmatpush.xpose.msra.mxu3 %v290_v17 }
  0x2e   :  { %351 = vmatpush.xpose.msra.mxu0 %v289_v16  ;;  %440 = vmatpush.xpose.msra.mxu1 %v290_v17  ;;  %v291_v16 = vld [vmem:[#allocation6 + $0x160] sm:$0xff]  ;;  %v292_v17 = vld [vmem:[#allocation6 + $0x168] sm:$0xff] }
  0x31   :  { %1005 = vmatpush.xpose.msra.mxu2 %v283_v18  ;;  %1021 = vmatpush.xpose.msra.mxu3 %v284_v19 }
  0x32   :  { %352 = vmatpush.xpose.msra.mxu0 %v283_v18  ;;  %441 = vmatpush.xpose.msra.mxu1 %v284_v19  ;;  %v199_v18 = vld [vmem:[#allocation3 + $0x300] sm:$0xff]  ;;  %v200_v19 = vld [vmem:[#allocation3 + $0x308] sm:$0xff] }
  0x35   :  { %1006 = vmatpush.xpose.msra.mxu2 %v277_v20  ;;  %1022 = vmatpush.xpose.msra.mxu3 %v278_v21 }
  0x36   :  { %353 = vmatpush.xpose.msra.mxu0 %v277_v20  ;;  %442 = vmatpush.xpose.msra.mxu1 %v278_v21  ;;  %v293_v20 = vld [vmem:[#allocation6 + $0x170] sm:$0xff]  ;;  %v294_v21 = vld [vmem:[#allocation6 + $0x178] sm:$0xff] }
  0x39   :  { %1007 = vmatpush.xpose.msra.mxu2 %v271_v22  ;;  %1023 = vmatpush.xpose.msra.mxu3 %v272_v23 }
  0x3a   :  { %354 = vmatpush.xpose.msra.mxu0 %v271_v22  ;;  %443 = vmatpush.xpose.msra.mxu1 %v272_v23  ;;  %v285_v22 = vld [vmem:[#allocation6 + $0x130] sm:$0xff]  ;;  %v286_v23 = vld [vmem:[#allocation6 + $0x138] sm:$0xff] }
  0x3d   :  { %1008 = vmatpush.xpose.msra.mxu2 %v265_v24  ;;  %1024 = vmatpush.xpose.msra.mxu3 %v266_v25 }
  0x3e   :  { %355 = vmatpush.xpose.msra.mxu0 %v265_v24  ;;  %444 = vmatpush.xpose.msra.mxu1 %v266_v25  ;;  %v127_v24 = vld [vmem:[#allocation3 + $0xc0] sm:$0xff]  ;;  %v128_v25 = vld [vmem:[#allocation3 + $0xc8] sm:$0xff] }
  0x41   :  { %1009 = vmatpush.xpose.msra.mxu2 %v259_v26  ;;  %1025 = vmatpush.xpose.msra.mxu3 %v260_v27 }
  0x42   :  { %356 = vmatpush.xpose.msra.mxu0 %v259_v26  ;;  %445 = vmatpush.xpose.msra.mxu1 %v260_v27  ;;  %v287_v26 = vld [vmem:[#allocation6 + $0x140] sm:$0xff]  ;;  %v288_v27 = vld [vmem:[#allocation6 + $0x148] sm:$0xff] }
  0x45   :  { %1010 = vmatpush.xpose.msra.mxu2 %v253_v28  ;;  %1026 = vmatpush.xpose.msra.mxu3 %v254_v29 }
  0x46   :  { %357 = vmatpush.xpose.msra.mxu0 %v253_v28  ;;  %446 = vmatpush.xpose.msra.mxu1 %v254_v29  ;;  %v279_v28 = vld [vmem:[#allocation6 + $0x100] sm:$0xff]  ;;  %v280_v29 = vld [vmem:[#allocation6 + $0x108] sm:$0xff] }
  0x49   :  { %1011 = vmatpush.xpose.msra.mxu2 %v247_v30  ;;  %1027 = vmatpush.xpose.msra.mxu3 %v248_v31 }
  0x4a   :  { %358 = vmatpush.xpose.msra.mxu0 %v247_v30  ;;  %447 = vmatpush.xpose.msra.mxu1 %v248_v31  ;;  %v205_v30 = vld [vmem:[#allocation3 + $0x330] sm:$0xff]  ;;  %v206_v31 = vld [vmem:[#allocation3 + $0x338] sm:$0xff] }
  0x4c   :  { %395 = vmatmul.f32.vlgmr.msra.gmra.mxu2 %v175_v34  ;;  %484 = vmatmul.f32.vlgmr.msra.gmra.mxu3 %v176_v35  ;;  %v274_v34 = vld [vmem:[#allocation6 + $0xd8] sm:$0xff]  ;;  %v133_v35 = vld [vmem:[#allocation3 + $0xf0] sm:$0xff] }
  0x4d   :  { %521 = vmatpush.xpose.msrb.mxu2 %v339_v32  ;;  %610 = vmatpush.xpose.msrb.mxu3 %v340_v33  ;;  %v281_v32 = vld [vmem:[#allocation6 + $0x110] sm:$0xff] }
  0x4e   :  { %699 = vmatpush.xpose.msrb.mxu0 %v341_v36  ;;  %788 = vmatpush.xpose.msrb.mxu1 %v342_v37  ;;  %v273_v33 = vld [vmem:[#allocation6 + $0xd0] sm:$0xff]  ;;  %v134_v36 = vld [vmem:[#allocation3 + $0xf8] sm:$0xff] }
  0x4f   :  { %359 = vmatmul.f32.vlgmr.msra.gmra.mxu0 %v103_v40  ;;  %448 = vmatmul.f32.vlgmr.msra.gmra.mxu1 %v104_v41  ;;  %v282_v37 = vld [vmem:[#allocation6 + $0x118] sm:$0xff]  ;;  %v267_v40 = vld [vmem:[#allocation6 + $0xa0] sm:$0xff]  ;;  %v268_v41 = vld [vmem:[#allocation6 + $0xa8] sm:$0xff] }
  0x51   :  { %522 = vmatpush.xpose.msrb.mxu2 %v333_v38  ;;  %611 = vmatpush.xpose.msrb.mxu3 %v334_v39  ;;  %v275_v38 = vld [vmem:[#allocation6 + $0xe0] sm:$0xff]  ;;  %v276_v39 = vld [vmem:[#allocation6 + $0xe8] sm:$0xff] }
  0x52   :  { %700 = vmatpush.xpose.msrb.mxu0 %v335_v42  ;;  %789 = vmatpush.xpose.msrb.mxu1 %v336_v43  ;;  %v211_v42 = vld [vmem:[#allocation3 + $0x360] sm:$0xff]  ;;  %v212_v43 = vld [vmem:[#allocation3 + $0x368] sm:$0xff] }
  0x54   :  { %398 = vmatmul.f32.gmra.mxu2 %v181_v46  ;;  %487 = vmatmul.f32.gmra.mxu3 %v182_v47  ;;  %v140_v46 = vld [vmem:[#allocation3 + $0x128] sm:$0xff]  ;;  %v262_v47 = vld [vmem:[#allocation6 + $0x78] sm:$0xff] }
  0x55   :  { %523 = vmatpush.xpose.msrb.mxu2 %v327_v44  ;;  %612 = vmatpush.xpose.msrb.mxu3 %v328_v45  ;;  %v261_v44 = vld [vmem:[#allocation6 + $0x70] sm:$0xff]  ;;  %v139_v45 = vld [vmem:[#allocation3 + $0x120] sm:$0xff] }
  0x56   :  { %701 = vmatpush.xpose.msrb.mxu0 %v329_v48  ;;  %790 = vmatpush.xpose.msrb.mxu1 %v330_v49  ;;  %v269_v48 = vld [vmem:[#allocation6 + $0xb0] sm:$0xff]  ;;  %v270_v49 = vld [vmem:[#allocation6 + $0xb8] sm:$0xff] }
  0x57   :  { %362 = vmatmul.f32.gmra.mxu0 %v109_v52  ;;  %451 = vmatmul.f32.gmra.mxu1 %v110_v53  ;;  %v217_v52 = vld [vmem:[#allocation3 + $0x390] sm:$0xff]  ;;  %v218_v53 = vld [vmem:[#allocation3 + $0x398] sm:$0xff] }
  0x59   :  { %524 = vmatpush.xpose.msrb.mxu2 %v321_v50  ;;  %613 = vmatpush.xpose.msrb.mxu3 %v322_v51  ;;  %v255_v50 = vld [vmem:[#allocation6 + $0x40] sm:$0xff]  ;;  %v256_v51 = vld [vmem:[#allocation6 + $0x48] sm:$0xff] }
  0x5a   :  { %702 = vmatpush.xpose.msrb.mxu0 %v323_v54  ;;  %791 = vmatpush.xpose.msrb.mxu1 %v324_v55  ;;  %v145_v54 = vld [vmem:[#allocation3 + $0x150] sm:$0xff]  ;;  %v146_v55 = vld [vmem:[#allocation3 + $0x158] sm:$0xff] }
  0x5c   :  { %401 = vmatmul.f32.gmra.mxu2 %v187_v58  ;;  %490 = vmatmul.f32.gmra.mxu3 %v188_v59  ;;  %v264_v58 = vld [vmem:[#allocation6 + $0x88] sm:$0xff]  ;;  %v250_v59 = vld [vmem:[#allocation6 + $0x18] sm:$0xff] }
  0x5d   :  { %525 = vmatpush.xpose.msrb.mxu2 %v315_v56  ;;  %614 = vmatpush.xpose.msrb.mxu3 %v316_v57  ;;  %v263_v56 = vld [vmem:[#allocation6 + $0x80] sm:$0xff]  ;;  %v249_v57 = vld [vmem:[#allocation6 + $0x10] sm:$0xff] }
  0x5e   :  { %703 = vmatpush.xpose.msrb.mxu0 %v317_v60  ;;  %792 = vmatpush.xpose.msrb.mxu1 %v318_v61  ;;  %v257_v60 = vld [vmem:[#allocation6 + $0x50] sm:$0xff]  ;;  %v223_v61 = vld [vmem:[#allocation3 + $0x3c0] sm:$0xff] }
  0x5f   :  { %365 = vmatmul.f32.gmra.mxu0 %v115_v0  ;;  %454 = vmatmul.f32.gmra.mxu1 %v116_v1  ;;  %v152_v0 = vld [vmem:[#allocation3 + $0x188] sm:$0xff]  ;;  %v258_v1 = vld [vmem:[#allocation6 + $0x58] sm:$0xff] }
  0x61   :  { %526 = vmatpush.xpose.msrb.mxu2 %v309_v62  ;;  %615 = vmatpush.xpose.msrb.mxu3 %v310_v63  ;;  %v224_v62 = vld [vmem:[#allocation3 + $0x3c8] sm:$0xff]  ;;  %v151_v63 = vld [vmem:[#allocation3 + $0x180] sm:$0xff] }
  0x62   :  { %704 = vmatpush.xpose.msrb.mxu0 %v311_v2  ;;  %793 = vmatpush.xpose.msrb.mxu1 %v312_v3  ;;  %v251_v2 = vld [vmem:[#allocation6 + $0x20] sm:$0xff]  ;;  %v252_v3 = vld [vmem:[#allocation6 + $0x28] sm:$0xff] }
  0x64   :  { %404 = vmatmul.f32.gmra.mxu2 %v193_v6  ;;  %493 = vmatmul.f32.gmra.mxu3 %v194_v7  ;;  %v157_v6 = vld [vmem:[#allocation3 + $0x1b0] sm:$0xff]  ;;  %v158_v7 = vld [vmem:[#allocation3 + $0x1b8] sm:$0xff] }
  0x65   :  { %527 = vmatpush.xpose.msrb.mxu2 %v303_v4  ;;  %616 = vmatpush.xpose.msrb.mxu3 %v304_v5  ;;  %v229_v4 = vld [vmem:[#allocation3 + $0x3f0] sm:$0xff]  ;;  %v230_v5 = vld [vmem:[#allocation3 + $0x3f8] sm:$0xff] }
  0x66   :  { %705 = vmatpush.xpose.msrb.mxu0 %v305_v8  ;;  %794 = vmatpush.xpose.msrb.mxu1 %v306_v9  ;;  %v235_v8 = vld [vmem:[#allocation3 + $0x420] sm:$0xff]  ;;  %v236_v9 = vld [vmem:[#allocation3 + $0x428] sm:$0xff] }
  0x67   :  { %368 = vmatmul.f32.gmra.mxu0 %v121_v12  ;;  %457 = vmatmul.f32.gmra.mxu1 %v122_v13  ;;  %v241_v12 = vld [vmem:[#allocation3 + $0x450] sm:$0xff]  ;;  %v242_v13 = vld [vmem:[#allocation3 + $0x458] sm:$0xff] }
  0x69   :  { %528 = vmatpush.xpose.msrb.mxu2 %v297_v10  ;;  %617 = vmatpush.xpose.msrb.mxu3 %v298_v11  ;;  %v163_v10 = vld [vmem:[#allocation3 + $0x1e0] sm:$0xff]  ;;  %v164_v11 = vld [vmem:[#allocation3 + $0x1e8] sm:$0xff] }
  0x6a   :  { %706 = vmatpush.xpose.msrb.mxu0 %v299_v14  ;;  %795 = vmatpush.xpose.msrb.mxu1 %v300_v15  ;;  %v169_v14 = vld [vmem:[#allocation3 + $0x210] sm:$0xff]  ;;  %v170_v15 = vld [vmem:[#allocation3 + $0x218] sm:$0xff] }
  0x6c   :  { %407 = vmatmul.f32.gmra.mxu2 %v199_v18  ;;  %496 = vmatmul.f32.gmra.mxu3 %v200_v19  ;;  %v107_v18 = vld [vmem:[#allocation3 + $0x20] sm:$0xff]  ;;  %v108_v19 = vld [vmem:[#allocation3 + $0x28] sm:$0xff] }
  0x6d   :  { %529 = vmatpush.xpose.msrb.mxu2 %v291_v16  ;;  %618 = vmatpush.xpose.msrb.mxu3 %v292_v17  ;;  %v105_v16 = vld [vmem:[#allocation3 + $0x10] sm:$0xff]  ;;  %v106_v17 = vld [vmem:[#allocation3 + $0x18] sm:$0xff] }
  0x6e   :  { %707 = vmatpush.xpose.msrb.mxu0 %v293_v20  ;;  %796 = vmatpush.xpose.msrb.mxu1 %v294_v21  ;;  %v111_v20 = vld [vmem:[#allocation3 + $0x40] sm:$0xff]  ;;  %v112_v21 = vld [vmem:[#allocation3 + $0x48] sm:$0xff] }
  0x6f   :  { %371 = vmatmul.f32.gmra.mxu0 %v127_v24  ;;  %460 = vmatmul.f32.gmra.mxu1 %v128_v25  ;;  %v117_v24 = vld [vmem:[#allocation3 + $0x70] sm:$0xff]  ;;  %v118_v25 = vld [vmem:[#allocation3 + $0x78] sm:$0xff] }
  0x71   :  { %530 = vmatpush.xpose.msrb.mxu2 %v285_v22  ;;  %619 = vmatpush.xpose.msrb.mxu3 %v286_v23  ;;  %v113_v22 = vld [vmem:[#allocation3 + $0x50] sm:$0xff]  ;;  %v114_v23 = vld [vmem:[#allocation3 + $0x58] sm:$0xff] }
  0x72   :  { %708 = vmatpush.xpose.msrb.mxu0 %v287_v26  ;;  %797 = vmatpush.xpose.msrb.mxu1 %v288_v27  ;;  %v119_v26 = vld [vmem:[#allocation3 + $0x80] sm:$0xff]  ;;  %v120_v27 = vld [vmem:[#allocation3 + $0x88] sm:$0xff] }
  0x74   :  { %410 = vmatmul.f32.gmra.mxu2 %v205_v30  ;;  %499 = vmatmul.f32.gmra.mxu3 %v206_v31  ;;  %v125_v30 = vld [vmem:[#allocation3 + $0xb0] sm:$0xff]  ;;  %v126_v31 = vld [vmem:[#allocation3 + $0xb8] sm:$0xff] }
  0x75   :  { %531 = vmatpush.xpose.msrb.mxu2 %v279_v28  ;;  %620 = vmatpush.xpose.msrb.mxu3 %v280_v29  ;;  %v123_v28 = vld [vmem:[#allocation3 + $0xa0] sm:$0xff]  ;;  %v124_v29 = vld [vmem:[#allocation3 + $0xa8] sm:$0xff] }
  0x76   :  { %709 = vmatpush.xpose.msrb.mxu0 %v281_v32  ;;  %798 = vmatpush.xpose.msrb.mxu1 %v282_v37  ;;  %v129_v32 = vld [vmem:[#allocation3 + $0xd0] sm:$0xff]  ;;  %v132_v37 = vld [vmem:[#allocation3 + $0xe8] sm:$0xff] }
  0x77   :  { %374 = vmatmul.f32.gmra.mxu0 %v133_v35  ;;  %463 = vmatmul.f32.gmra.mxu1 %v134_v36  ;;  %v131_v36 = vld [vmem:[#allocation3 + $0xe0] sm:$0xff] }
  0x79   :  { %532 = vmatpush.xpose.msrb.mxu2 %v273_v33  ;;  %621 = vmatpush.xpose.msrb.mxu3 %v274_v34  ;;  %v130_v33 = vld [vmem:[#allocation3 + $0xd8] sm:$0xff] }
  0x7a   :  { %710 = vmatpush.xpose.msrb.mxu0 %v275_v38  ;;  %799 = vmatpush.xpose.msrb.mxu1 %v276_v39 }
  0x7c   :  { %413 = vmatmul.f32.gmra.mxu2 %v211_v42  ;;  %502 = vmatmul.f32.gmra.mxu3 %v212_v43  ;;  %v136_v42 = vld [vmem:[#allocation3 + $0x108] sm:$0xff] }
  0x7d   :  { %533 = vmatpush.xpose.msrb.mxu2 %v267_v40  ;;  %622 = vmatpush.xpose.msrb.mxu3 %v268_v41  ;;  %v135_v41 = vld [vmem:[#allocation3 + $0x100] sm:$0xff] }
  0x7e   :  { %711 = vmatpush.xpose.msrb.mxu0 %v269_v48  ;;  %800 = vmatpush.xpose.msrb.mxu1 %v270_v49 }
  0x7f   :  { %377 = vmatmul.f32.gmra.mxu0 %v139_v45  ;;  %466 = vmatmul.f32.gmra.mxu1 %v140_v46  ;;  %v137_v45 = vld [vmem:[#allocation3 + $0x110] sm:$0xff]  ;;  %v138_v46 = vld [vmem:[#allocation3 + $0x118] sm:$0xff] }
  0x81   :  { %534 = vmatpush.xpose.msrb.mxu2 %v261_v44  ;;  %623 = vmatpush.xpose.msrb.mxu3 %v262_v47 }
  0x82   :  { %712 = vmatpush.xpose.msrb.mxu0 %v263_v56  ;;  %801 = vmatpush.xpose.msrb.mxu1 %v264_v58 }
  0x84   :  { %416 = vmatmul.f32.gmra.mxu2 %v217_v52  ;;  %505 = vmatmul.f32.gmra.mxu3 %v218_v53 }
  0x85   :  { %535 = vmatpush.xpose.msrb.mxu2 %v255_v50  ;;  %624 = vmatpush.xpose.msrb.mxu3 %v256_v51  ;;  %v141_v50 = vld [vmem:[#allocation3 + $0x130] sm:$0xff]  ;;  %v142_v51 = vld [vmem:[#allocation3 + $0x138] sm:$0xff] }
  0x86   :  { %713 = vmatpush.xpose.msrb.mxu0 %v257_v60  ;;  %802 = vmatpush.xpose.msrb.mxu1 %v258_v1  ;;  %v148_v60 = vld [vmem:[#allocation3 + $0x168] sm:$0xff] }
  0x87   :  { %380 = vmatmul.f32.gmra.mxu0 %v145_v54  ;;  %469 = vmatmul.f32.gmra.mxu1 %v146_v55  ;;  %v143_v54 = vld [vmem:[#allocation3 + $0x140] sm:$0xff]  ;;  %v144_v55 = vld [vmem:[#allocation3 + $0x148] sm:$0xff] }
  0x89   :  { %536 = vmatpush.xpose.msrb.mxu2 %v249_v57  ;;  %625 = vmatpush.xpose.msrb.mxu3 %v250_v59  ;;  %v147_v59 = vld [vmem:[#allocation3 + $0x160] sm:$0xff] }
  0x8a   :  { %714 = vmatpush.xpose.msrb.mxu0 %v251_v2  ;;  %803 = vmatpush.xpose.msrb.mxu1 %v252_v3 }
  0x8c   :  { %419 = vmatmul.f32.gmra.mxu2 %v223_v61  ;;  %508 = vmatmul.f32.gmra.mxu3 %v224_v62 }
  0x8f   :  { %383 = vmatmul.f32.gmra.mxu0 %v151_v63  ;;  %472 = vmatmul.f32.gmra.mxu1 %v152_v0  ;;  %v149_v63 = vld [vmem:[#allocation3 + $0x170] sm:$0xff]  ;;  %v150_v0 = vld [vmem:[#allocation3 + $0x178] sm:$0xff] }
  0x94   :  { %422 = vmatmul.f32.gmra.mxu2 %v229_v4  ;;  %511 = vmatmul.f32.gmra.mxu3 %v230_v5  ;;  %v153_v4 = vld [vmem:[#allocation3 + $0x190] sm:$0xff]  ;;  %v154_v5 = vld [vmem:[#allocation3 + $0x198] sm:$0xff] }
  0x97   :  { %386 = vmatmul.f32.gmra.mxu0 %v157_v6  ;;  %475 = vmatmul.f32.gmra.mxu1 %v158_v7 }
  0x9c   :  { %425 = vmatmul.f32.gmra.mxu2 %v235_v8  ;;  %514 = vmatmul.f32.gmra.mxu3 %v236_v9  ;;  %v155_v8 = vld [vmem:[#allocation3 + $0x1a0] sm:$0xff]  ;;  %v156_v9 = vld [vmem:[#allocation3 + $0x1a8] sm:$0xff] }
  0x9f   :  { %389 = vmatmul.f32.gmra.mxu0 %v163_v10  ;;  %478 = vmatmul.f32.gmra.mxu1 %v164_v11 }
  0xa4   :  { %428 = vmatmul.f32.gmra.mxu2 %v241_v12  ;;  %517 = vmatmul.f32.gmra.mxu3 %v242_v13  ;;  %v159_v13 = vld [vmem:[#allocation3 + $0x1c0] sm:$0xff] }
  0xa7   :  { %392 = vmatmul.f32.gmra.mxu0 %v169_v14  ;;  %481 = vmatmul.f32.gmra.mxu1 %v170_v15  ;;  %v160_v14 = vld [vmem:[#allocation3 + $0x1c8] sm:$0xff] }
  0xac   :  { %537 = vmatmul.f32.vlgmr.msrb.gmra.mxu2 %v105_v16  ;;  %626 = vmatmul.f32.vlgmr.msrb.gmra.mxu3 %v106_v17  ;;  %v161_v17 = vld [vmem:[#allocation3 + $0x1d0] sm:$0xff] }
  0xaf   :  { %715 = vmatmul.f32.vlgmr.msrb.gmra.mxu0 %v107_v18  ;;  %804 = vmatmul.f32.vlgmr.msrb.gmra.mxu1 %v108_v19  ;;  %v162_v18 = vld [vmem:[#allocation3 + $0x1d8] sm:$0xff] }
  0xb4   :  { %540 = vmatmul.f32.gmra.mxu2 %v111_v20  ;;  %629 = vmatmul.f32.gmra.mxu3 %v112_v21 }
  0xb7   :  { %718 = vmatmul.f32.gmra.mxu0 %v113_v22  ;;  %807 = vmatmul.f32.gmra.mxu1 %v114_v23  ;;  %v165_v22 = vld [vmem:[#allocation3 + $0x1f0] sm:$0xff]  ;;  %v166_v23 = vld [vmem:[#allocation3 + $0x1f8] sm:$0xff] }
  0xbc   :  { %543 = vmatmul.f32.gmra.mxu2 %v117_v24  ;;  %632 = vmatmul.f32.gmra.mxu3 %v118_v25 }
  0xbf   :  { %721 = vmatmul.f32.gmra.mxu0 %v119_v26  ;;  %810 = vmatmul.f32.gmra.mxu1 %v120_v27  ;;  %v167_v26 = vld [vmem:[#allocation3 + $0x200] sm:$0xff]  ;;  %v168_v27 = vld [vmem:[#allocation3 + $0x208] sm:$0xff] }
  0xc4   :  { %546 = vmatmul.f32.gmra.mxu2 %v123_v28  ;;  %635 = vmatmul.f32.gmra.mxu3 %v124_v29 }
  0xc7   :  { %724 = vmatmul.f32.gmra.mxu0 %v125_v30  ;;  %813 = vmatmul.f32.gmra.mxu1 %v126_v31  ;;  %v171_v31 = vld [vmem:[#allocation3 + $0x220] sm:$0xff] }
  0xcc   :  { %549 = vmatmul.f32.gmra.mxu2 %v129_v32  ;;  %638 = vmatmul.f32.gmra.mxu3 %v130_v33  ;;  %v1147_v34 = vpop.f32.mrf.mxu0  ;;  %v1149_v35 = vpop.f32.mrf.mxu1  ;;  %v172_v32 = vld [vmem:[#allocation3 + $0x228] sm:$0xff] }
  0xcf   :  { %v396_v38 = vpop.f32.mrf.mxu2  ;;  %v485_v39 = vpop.f32.mrf.mxu3  ;;  %727 = vmatmul.f32.gmra.mxu0 %v131_v36  ;;  %816 = vmatmul.f32.gmra.mxu1 %v132_v37  ;;  %v173_v37 = vld [vmem:[#allocation3 + $0x230] sm:$0xff] }
  0xd0   :  { %v1151_v40 = vadd.f32 %v485_v39, %v396_v38  ;;  %v174_v38 = vld [vmem:[#allocation3 + $0x238] sm:$0xff] }
  0xd4   :  { %552 = vmatmul.f32.gmra.mxu2 %v135_v41  ;;  %641 = vmatmul.f32.gmra.mxu3 %v136_v42  ;;  %v1153_v43 = vpop.f32.mrf.mxu0  ;;  %v1155_v44 = vpop.f32.mrf.mxu1 }
  0xd7   :  { %v399_v47 = vpop.f32.mrf.mxu2  ;;  %v488_v48 = vpop.f32.mrf.mxu3  ;;  %730 = vmatmul.f32.gmra.mxu0 %v137_v45  ;;  %819 = vmatmul.f32.gmra.mxu1 %v138_v46  ;;  %v177_v45 = vld [vmem:[#allocation3 + $0x250] sm:$0xff]  ;;  %v178_v46 = vld [vmem:[#allocation3 + $0x258] sm:$0xff] }
  0xd8   :  { %v1157_v49 = vadd.f32 %v488_v48, %v399_v47 }
  0xdc   :  { %555 = vmatmul.f32.gmra.mxu2 %v141_v50  ;;  %644 = vmatmul.f32.gmra.mxu3 %v142_v51  ;;  %v1159_v52 = vpop.f32.mrf.mxu0  ;;  %v1161_v53 = vpop.f32.mrf.mxu1  ;;  %v179_v50 = vld [vmem:[#allocation3 + $0x260] sm:$0xff]  ;;  %v180_v51 = vld [vmem:[#allocation3 + $0x268] sm:$0xff] }
  0xdf   :  { %v402_v56 = vpop.f32.mrf.mxu2  ;;  %v491_v57 = vpop.f32.mrf.mxu3  ;;  %733 = vmatmul.f32.gmra.mxu0 %v143_v54  ;;  %822 = vmatmul.f32.gmra.mxu1 %v144_v55 }
  0xe0   :  { %v1163_v58 = vadd.f32 %v491_v57, %v402_v56  ;;  %v183_v57 = vld [vmem:[#allocation3 + $0x280] sm:$0xff] }
  0xe4   :  { %558 = vmatmul.f32.gmra.mxu2 %v147_v59  ;;  %647 = vmatmul.f32.gmra.mxu3 %v148_v60  ;;  %v1165_v61 = vpop.f32.mrf.mxu0  ;;  %v1167_v62 = vpop.f32.mrf.mxu1  ;;  %v184_v59 = vld [vmem:[#allocation3 + $0x288] sm:$0xff] }
  0xe7   :  { %v405_v1 = vpop.f32.mrf.mxu2  ;;  %v494_v2 = vpop.f32.mrf.mxu3  ;;  %736 = vmatmul.f32.gmra.mxu0 %v149_v63  ;;  %825 = vmatmul.f32.gmra.mxu1 %v150_v0  ;;  %v185_v0 = vld [vmem:[#allocation3 + $0x290] sm:$0xff] }
  0xe8   :  { %v1169_v3 = vadd.f32 %v494_v2, %v405_v1  ;;  %v186_v1 = vld [vmem:[#allocation3 + $0x298] sm:$0xff] }
  0xec   :  { %561 = vmatmul.f32.gmra.mxu2 %v153_v4  ;;  %650 = vmatmul.f32.gmra.mxu3 %v154_v5  ;;  %v1171_v6 = vpop.f32.mrf.mxu0  ;;  %v1173_v7 = vpop.f32.mrf.mxu1 }
  0xef   :  { %v408_v10 = vpop.f32.mrf.mxu2  ;;  %v497_v11 = vpop.f32.mrf.mxu3  ;;  %739 = vmatmul.f32.gmra.mxu0 %v155_v8  ;;  %828 = vmatmul.f32.gmra.mxu1 %v156_v9  ;;  %v189_v8 = vld [vmem:[#allocation3 + $0x2b0] sm:$0xff]  ;;  %v190_v9 = vld [vmem:[#allocation3 + $0x2b8] sm:$0xff] }
  0xf0   :  { %v1175_v12 = vadd.f32 %v497_v11, %v408_v10 }
  0xf4   :  { %564 = vmatmul.f32.gmra.mxu2 %v159_v13  ;;  %653 = vmatmul.f32.gmra.mxu3 %v160_v14  ;;  %v1177_v15 = vpop.f32.mrf.mxu0  ;;  %v1179_v16 = vpop.f32.mrf.mxu1  ;;  %v191_v13 = vld [vmem:[#allocation3 + $0x2c0] sm:$0xff]  ;;  %v192_v14 = vld [vmem:[#allocation3 + $0x2c8] sm:$0xff] }
  0xf7   :  { %v411_v19 = vpop.f32.mrf.mxu2  ;;  %v500_v20 = vpop.f32.mrf.mxu3  ;;  %742 = vmatmul.f32.gmra.mxu0 %v161_v17  ;;  %831 = vmatmul.f32.gmra.mxu1 %v162_v18 }
  0xf8   :  { %v1181_v21 = vadd.f32 %v500_v20, %v411_v19  ;;  %v195_v20 = vld [vmem:[#allocation3 + $0x2e0] sm:$0xff] }
  0xfc   :  { %567 = vmatmul.f32.gmra.mxu2 %v165_v22  ;;  %656 = vmatmul.f32.gmra.mxu3 %v166_v23  ;;  %v1183_v24 = vpop.f32.mrf.mxu0  ;;  %v1185_v25 = vpop.f32.mrf.mxu1  ;;  %v196_v22 = vld [vmem:[#allocation3 + $0x2e8] sm:$0xff] }
  0xff   :  { %v414_v28 = vpop.f32.mrf.mxu2  ;;  %v503_v29 = vpop.f32.mrf.mxu3  ;;  %745 = vmatmul.f32.gmra.mxu0 %v167_v26  ;;  %834 = vmatmul.f32.gmra.mxu1 %v168_v27  ;;  %v197_v27 = vld [vmem:[#allocation3 + $0x2f0] sm:$0xff] }
 0x100   :  { %v1187_v30 = vadd.f32 %v503_v29, %v414_v28  ;;  %v198_v28 = vld [vmem:[#allocation3 + $0x2f8] sm:$0xff] }
 0x104   :  { %570 = vmatmul.f32.gmra.mxu2 %v171_v31  ;;  %659 = vmatmul.f32.gmra.mxu3 %v172_v32  ;;  %v1189_v33 = vpop.f32.mrf.mxu0  ;;  %v1191_v36 = vpop.f32.mrf.mxu1 }
 0x107   :  { %v417_v39 = vpop.f32.mrf.mxu2  ;;  %v506_v41 = vpop.f32.mrf.mxu3  ;;  %748 = vmatmul.f32.gmra.mxu0 %v173_v37  ;;  %837 = vmatmul.f32.gmra.mxu1 %v174_v38  ;;  %v201_v37 = vld [vmem:[#allocation3 + $0x310] sm:$0xff]  ;;  %v202_v38 = vld [vmem:[#allocation3 + $0x318] sm:$0xff] }
 0x108   :  { %v1193_v42 = vadd.f32 %v506_v41, %v417_v39 }
 0x10c   :  { %573 = vmatmul.f32.gmra.mxu2 %v177_v45  ;;  %662 = vmatmul.f32.gmra.mxu3 %v178_v46  ;;  %v1195_v47 = vpop.f32.mrf.mxu0  ;;  %v1197_v48 = vpop.f32.mrf.mxu1  ;;  %v203_v45 = vld [vmem:[#allocation3 + $0x320] sm:$0xff]  ;;  %v204_v46 = vld [vmem:[#allocation3 + $0x328] sm:$0xff] }
 0x10f   :  { %v420_v54 = vpop.f32.mrf.mxu2  ;;  %v509_v55 = vpop.f32.mrf.mxu3  ;;  %751 = vmatmul.f32.gmra.mxu0 %v179_v50  ;;  %840 = vmatmul.f32.gmra.mxu1 %v180_v51  ;;  %v450_v50 = vadd.f32 %v1149_v35, %v1147_v34  ;;  %v210_v34 = vld [vmem:[#allocation3 + $0x358] sm:$0xff]  ;;  %v453_v35 = vadd.f32 %v1155_v44, %v1153_v43  ;;  %v456_v43 = vadd.f32 %v1161_v53, %v1159_v52 }
 0x110   :  { %v1199_v56 = vadd.f32 %v509_v55, %v420_v54  ;;  %v459_v52 = vadd.f32 %v1167_v62, %v1165_v61  ;;  %v462_v61 = vadd.f32 %v1173_v7, %v1171_v6  ;;  %v465_v6 = vadd.f32 %v1179_v16, %v1177_v15 }
 0x111   :  { %v468_v15 = vadd.f32 %v1185_v25, %v1183_v24  ;;  %v471_v24 = vadd.f32 %v1191_v36, %v1189_v33 }
 0x114   :  { %576 = vmatmul.f32.gmra.mxu2 %v183_v57  ;;  %665 = vmatmul.f32.gmra.mxu3 %v184_v59  ;;  %v1201_v60 = vpop.f32.mrf.mxu0  ;;  %v1203_v63 = vpop.f32.mrf.mxu1  ;;  %v207_v57 = vld [vmem:[#allocation3 + $0x340] sm:$0xff]  ;;  %v208_v59 = vld [vmem:[#allocation3 + $0x348] sm:$0xff] }
 0x117   :  { %v423_v2 = vpop.f32.mrf.mxu2  ;;  %v512_v4 = vpop.f32.mrf.mxu3  ;;  %754 = vmatmul.f32.gmra.mxu0 %v185_v0  ;;  %843 = vmatmul.f32.gmra.mxu1 %v186_v1 }
 0x118   :  { %v1205_v5 = vadd.f32 %v512_v4, %v423_v2  ;;  %v1224_v2 = vld [vmem:[%s1289_s2] ss:$0 sm:$0xff]  ;;  %s1118_s2 = smov [#allocation8]  }
 0x119   :  { %s980_s24 = sshll.u32 %s1118_s2, 4  ;;  %s981_s24 = int_to_ptr.vmem [resolvable:$true] %s980_s24 }
 0x11c   :  { %579 = vmatmul.f32.gmra.mxu2 %v189_v8  ;;  %668 = vmatmul.f32.gmra.mxu3 %v190_v9  ;;  %v1207_v10 = vpop.f32.mrf.mxu0  ;;  %v1209_v11 = vpop.f32.mrf.mxu1  ;;  %v209_v9 = vld [vmem:[#allocation3 + $0x350] sm:$0xff] }
 0x11f   :  { %v426_v17 = vpop.f32.mrf.mxu2  ;;  %v515_v18 = vpop.f32.mrf.mxu3  ;;  %757 = vmatmul.f32.gmra.mxu0 %v191_v13  ;;  %846 = vmatmul.f32.gmra.mxu1 %v192_v14 }
 0x120   :  { %v1211_v19 = vadd.f32 %v515_v18, %v426_v17 }
 0x124   :  { %582 = vmatmul.f32.gmra.mxu2 %v195_v20  ;;  %671 = vmatmul.f32.gmra.mxu3 %v196_v22  ;;  %v1213_v23 = vpop.f32.mrf.mxu0  ;;  %v1215_v26 = vpop.f32.mrf.mxu1  ;;  %v213_v22 = vld [vmem:[#allocation3 + $0x370] sm:$0xff] }
 0x127   :  { %v429_v29 = vpop.f32.mrf.mxu2  ;;  %v518_v31 = vpop.f32.mrf.mxu3  ;;  %760 = vmatmul.f32.gmra.mxu0 %v197_v27  ;;  %849 = vmatmul.f32.gmra.mxu1 %v198_v28  ;;  %v214_v27 = vld [vmem:[#allocation3 + $0x378] sm:$0xff] }
 0x128   :  { %v1217_v32 = vadd.f32 %v518_v31, %v429_v29 }
 0x12c   :  { %585 = vmatmul.f32.gmra.mxu2 %v201_v37  ;;  %674 = vmatmul.f32.gmra.mxu3 %v202_v38  ;;  %v716_v39 = vpop.f32.mrf.mxu0  ;;  %v805_v41 = vpop.f32.mrf.mxu1  ;;  %v215_v38 = vld [vmem:[#allocation3 + $0x380] sm:$0xff] }
 0x12f   :  { %v538_v51 = vpop.f32.mrf.mxu2  ;;  %v627_v54 = vpop.f32.mrf.mxu3  ;;  %763 = vmatmul.f32.gmra.mxu0 %v203_v45  ;;  %852 = vmatmul.f32.gmra.mxu1 %v204_v46 }
 0x130   :  { %v539_v55 = vadd.f32 %v538_v51, %v450_v50  ;;  %v219_v51 = vld [vmem:[#allocation3 + $0x3a0] sm:$0xff] }
 0x132   :  { %v628_v0 = vadd.f32 %v627_v54, %v539_v55  ;;  %v220_v54 = vld [vmem:[#allocation3 + $0x3a8] sm:$0xff] }
 0x134   :  { %v717_v1 = vadd.f32 %v716_v39, %v628_v0  ;;  %588 = vmatmul.f32.gmra.mxu2 %v207_v57  ;;  %677 = vmatmul.f32.gmra.mxu3 %v208_v59  ;;  %v719_v4 = vpop.f32.mrf.mxu0  ;;  %v808_v8 = vpop.f32.mrf.mxu1  ;;  %v216_v39 = vld [vmem:[#allocation3 + $0x388] sm:$0xff] }
 0x136   :  { %v806_v13 = vadd.f32 %v805_v41, %v717_v1  ;;  %v221_v1 = vld [vmem:[#allocation3 + $0x3b0] sm:$0xff] }
 0x137   :  { %v541_v14 = vpop.f32.mrf.mxu2  ;;  %v630_v17 = vpop.f32.mrf.mxu3  ;;  %766 = vmatmul.f32.gmra.mxu0 %v209_v9  ;;  %855 = vmatmul.f32.gmra.mxu1 %v210_v34 }
 0x138   :  { %v877_v18 = vadd.f32 %v1224_v2, %v806_v13  ;;  %v542_v20 = vadd.f32 %v541_v14, %v453_v35  ;;  %v225_v13 = vld [vmem:[#allocation3 + $0x3d0] sm:$0xff]  ;;  %v226_v14 = vld [vmem:[#allocation3 + $0x3d8] sm:$0xff] }
 0x13a   :  { %952 = vst [vmem:[#allocation8] sm:$0xff] %v877_v18  ;;  %v631_v28 = vadd.f32 %v630_v17, %v542_v20 }
 0x13c   :  { %v720_v29 = vadd.f32 %v719_v4, %v631_v28  ;;  %591 = vmatmul.f32.gmra.mxu2 %v213_v22  ;;  %680 = vmatmul.f32.gmra.mxu3 %v214_v27  ;;  %v722_v31 = vpop.f32.mrf.mxu0  ;;  %v811_v37 = vpop.f32.mrf.mxu1  ;;  %v222_v4 = vld [vmem:[#allocation3 + $0x3b8] sm:$0xff]  ;;  %v227_v27 = vld [vmem:[#allocation3 + $0x3e0] sm:$0xff]  ;;  %v228_v28 = vld [vmem:[#allocation3 + $0x3e8] sm:$0xff] }
 0x13e   :  { %v809_v44 = vadd.f32 %v808_v8, %v720_v29 }
 0x13f   :  { %v544_v41 = vpop.f32.mrf.mxu2  ;;  %v633_v45 = vpop.f32.mrf.mxu3  ;;  %769 = vmatmul.f32.gmra.mxu0 %v215_v38  ;;  %858 = vmatmul.f32.gmra.mxu1 %v216_v39  ;;  %v231_v39 = vld [vmem:[#allocation3 + $0x400] sm:$0xff] }
 0x140   :  { %v878_v46 = vadd.f32 %v1224_v2, %v809_v44  ;;  %v545_v50 = vadd.f32 %v544_v41, %v456_v43  ;;  %v232_v43 = vld [vmem:[#allocation3 + $0x408] sm:$0xff] }
 0x142   :  { %953 = vst [vmem:[#allocation8 + $0x8] sm:$0xff] %v878_v46  ;;  %v634_v55 = vadd.f32 %v633_v45, %v545_v50  ;;  %v233_v50 = vld [vmem:[#allocation3 + $0x410] sm:$0xff] }
 0x144   :  { %v723_v57 = vadd.f32 %v722_v31, %v634_v55  ;;  %594 = vmatmul.f32.gmra.mxu2 %v219_v51  ;;  %683 = vmatmul.f32.gmra.mxu3 %v220_v54  ;;  %v725_v59 = vpop.f32.mrf.mxu0  ;;  %v814_v0 = vpop.f32.mrf.mxu1  ;;  %v234_v51 = vld [vmem:[#allocation3 + $0x418] sm:$0xff] }
 0x146   :  { %v812_v53 = vadd.f32 %v811_v37, %v723_v57 }
 0x147   :  { %v547_v8 = vpop.f32.mrf.mxu2  ;;  %v636_v9 = vpop.f32.mrf.mxu3  ;;  %772 = vmatmul.f32.gmra.mxu0 %v221_v1  ;;  %861 = vmatmul.f32.gmra.mxu1 %v222_v4  ;;  %v238_v1 = vld [vmem:[#allocation3 + $0x438] sm:$0xff] }
 0x148   :  { %v879_v34 = vadd.f32 %v1224_v2, %v812_v53  ;;  %v548_v35 = vadd.f32 %v547_v8, %v459_v52 }
 0x14a   :  { %954 = vst [vmem:[#allocation8 + $0x10] sm:$0xff] %v879_v34  ;;  %v637_v17 = vadd.f32 %v636_v9, %v548_v35  ;;  %v239_v9 = vld [vmem:[#allocation3 + $0x440] sm:$0xff]  ;;  %v240_v34 = vld [vmem:[#allocation3 + $0x448] sm:$0xff] }
 0x14c   :  { %v726_v18 = vadd.f32 %v725_v59, %v637_v17  ;;  %597 = vmatmul.f32.gmra.mxu2 %v225_v13  ;;  %686 = vmatmul.f32.gmra.mxu3 %v226_v14  ;;  %v728_v20 = vpop.f32.mrf.mxu0  ;;  %v817_v22 = vpop.f32.mrf.mxu1 }
 0x14e   :  { %v815_v62 = vadd.f32 %v814_v0, %v726_v18  ;;  %v237_v0 = vld [vmem:[#allocation3 + $0x430] sm:$0xff]  ;;  %v243_v18 = vld [vmem:[#allocation3 + $0x460] sm:$0xff] }
 0x14f   :  { %v550_v29 = vpop.f32.mrf.mxu2  ;;  %v639_v31 = vpop.f32.mrf.mxu3  ;;  %775 = vmatmul.f32.gmra.mxu0 %v227_v27  ;;  %864 = vmatmul.f32.gmra.mxu1 %v228_v28 }
 0x150   :  { %v880_v37 = vadd.f32 %v1224_v2, %v815_v62  ;;  %v551_v38 = vadd.f32 %v550_v29, %v462_v61  ;;  %v245_v62 = vld [vmem:[#allocation3 + $0x470] sm:$0xff]  ;;  %v246_v29 = vld [vmem:[#allocation3 + $0x478] sm:$0xff] }
 0x152   :  { %955 = vst [vmem:[#allocation8 + $0x18] sm:$0xff] %v880_v37  ;;  %v640_v44 = vadd.f32 %v639_v31, %v551_v38 }
 0x154   :  { %v729_v41 = vadd.f32 %v728_v20, %v640_v44  ;;  %600 = vmatmul.f32.gmra.mxu2 %v231_v39  ;;  %689 = vmatmul.f32.gmra.mxu3 %v232_v43  ;;  %v731_v45 = vpop.f32.mrf.mxu0  ;;  %v820_v46 = vpop.f32.mrf.mxu1  ;;  %v244_v20 = vld [vmem:[#allocation3 + $0x468] sm:$0xff] }
 0x156   :  { %v818_v7 = vadd.f32 %v817_v22, %v729_v41 }
 0x157   :  { %v553_v54 = vpop.f32.mrf.mxu2  ;;  %v642_v55 = vpop.f32.mrf.mxu3  ;;  %778 = vmatmul.f32.gmra.mxu0 %v233_v50  ;;  %867 = vmatmul.f32.gmra.mxu1 %v234_v51 }
 0x158   :  { %v881_v57 = vadd.f32 %v1224_v2, %v818_v7  ;;  %v554_v59 = vadd.f32 %v553_v54, %v465_v6 }
 0x15a   :  { %956 = vst [vmem:[#allocation8 + $0x20] sm:$0xff] %v881_v57  ;;  %v643_v4 = vadd.f32 %v642_v55, %v554_v59  ;;  %v477_v59 = vadd.f32 %v1203_v63, %v1201_v60 }
 0x15c   :  { %v732_v52 = vadd.f32 %v731_v45, %v643_v4  ;;  %603 = vmatmul.f32.gmra.mxu2 %v237_v0  ;;  %692 = vmatmul.f32.gmra.mxu3 %v238_v1  ;;  %v734_v53 = vpop.f32.mrf.mxu0  ;;  %v823_v8 = vpop.f32.mrf.mxu1 }
 0x15e   :  { %v821_v16 = vadd.f32 %v820_v46, %v732_v52  ;;  %v474_v46 = vadd.f32 %v1197_v48, %v1195_v47 }
 0x15f   :  { %v556_v35 = vpop.f32.mrf.mxu2  ;;  %v645_v13 = vpop.f32.mrf.mxu3  ;;  %781 = vmatmul.f32.gmra.mxu0 %v239_v9  ;;  %870 = vmatmul.f32.gmra.mxu1 %v240_v34  ;;  %v480_v34 = vadd.f32 %v1209_v11, %v1207_v10 }
 0x160   :  { %v882_v14 = vadd.f32 %v1224_v2, %v821_v16  ;;  %v557_v17 = vadd.f32 %v556_v35, %v468_v15 }
 0x162   :  { %957 = vst [vmem:[#allocation8 + $0x28] sm:$0xff] %v882_v14  ;;  %v646_v22 = vadd.f32 %v645_v13, %v557_v17 }
 0x164   :  { %v735_v27 = vadd.f32 %v734_v53, %v646_v22  ;;  %606 = vmatmul.f32.gmra.mxu2 %v243_v18  ;;  %695 = vmatmul.f32.gmra.mxu3 %v244_v20  ;;  %v737_v28 = vpop.f32.mrf.mxu0  ;;  %v826_v61 = vpop.f32.mrf.mxu1  ;;  %v483_v20 = vadd.f32 %v1215_v26, %v1213_v23 }
 0x166   :  { %v824_v25 = vadd.f32 %v823_v8, %v735_v27 }
 0x167   :  { %v559_v31 = vpop.f32.mrf.mxu2  ;;  %v648_v37 = vpop.f32.mrf.mxu3  ;;  %784 = vmatmul.f32.gmra.mxu0 %v245_v62  ;;  %873 = vmatmul.f32.gmra.mxu1 %v246_v29 }
 0x168   :  { %v883_v38 = vadd.f32 %v1224_v2, %v824_v25  ;;  %v560_v39 = vadd.f32 %v559_v31, %v471_v24 }
 0x16a   :  { %958 = vst [vmem:[#allocation8 + $0x30] sm:$0xff] %v883_v38  ;;  %v649_v43 = vadd.f32 %v648_v37, %v560_v39 }
 0x16c   :  { %v738_v44 = vadd.f32 %v737_v28, %v649_v43  ;;  %v740_v41 = vpop.f32.mrf.mxu0  ;;  %v829_v45 = vpop.f32.mrf.mxu1 }
 0x16e   :  { %v827_v50 = vadd.f32 %v826_v61, %v738_v44 }
 0x16f   :  { %v562_v51 = vpop.f32.mrf.mxu2  ;;  %v651_v6 = vpop.f32.mrf.mxu3 }
 0x170   :  { %v884_v33 = vadd.f32 %v1224_v2, %v827_v50  ;;  %v563_v36 = vadd.f32 %v562_v51, %v474_v46 }
 0x172   :  { %959 = vst [vmem:[#allocation8 + $0x38] sm:$0xff] %v884_v33  ;;  %v652_v7 = vadd.f32 %v651_v6, %v563_v36 }
 0x174   :  { %v741_v54 = vadd.f32 %v740_v41, %v652_v7  ;;  %v743_v55 = vpop.f32.mrf.mxu0  ;;  %v832_v57 = vpop.f32.mrf.mxu1 }
 0x176   :  { %v830_v0 = vadd.f32 %v829_v45, %v741_v54 }
 0x177   :  { %v565_v1 = vpop.f32.mrf.mxu2  ;;  %v654_v4 = vpop.f32.mrf.mxu3 }
 0x178   :  { %v885_v52 = vadd.f32 %v1224_v2, %v830_v0  ;;  %v566_v47 = vadd.f32 %v565_v1, %v477_v59 }
 0x17a   :  { %960 = vst [vmem:[#allocation8 + $0x40] sm:$0xff] %v885_v52  ;;  %v655_v48 = vadd.f32 %v654_v4, %v566_v47 }
 0x17c   :  { %v744_v53 = vadd.f32 %v743_v55, %v655_v48  ;;  %v746_v8 = vpop.f32.mrf.mxu0  ;;  %v835_v9 = vpop.f32.mrf.mxu1 }
 0x17e   :  { %v833_v15 = vadd.f32 %v832_v57, %v744_v53 }
 0x17f   :  { %v568_v16 = vpop.f32.mrf.mxu2  ;;  %v657_v35 = vpop.f32.mrf.mxu3 }
 0x180   :  { %v886_v13 = vadd.f32 %v1224_v2, %v833_v15  ;;  %v569_v60 = vadd.f32 %v568_v16, %v480_v34 }
 0x182   :  { %961 = vst [vmem:[#allocation8 + $0x48] sm:$0xff] %v886_v13  ;;  %v658_v63 = vadd.f32 %v657_v35, %v569_v60 }
 0x184   :  { %v747_v14 = vadd.f32 %v746_v8, %v658_v63  ;;  %v749_v17 = vpop.f32.mrf.mxu0  ;;  %v838_v18 = vpop.f32.mrf.mxu1 }
 0x186   :  { %v836_v22 = vadd.f32 %v835_v9, %v747_v14 }
 0x187   :  { %v571_v27 = vpop.f32.mrf.mxu2  ;;  %v660_v28 = vpop.f32.mrf.mxu3 }
 0x188   :  { %v887_v61 = vadd.f32 %v1224_v2, %v836_v22  ;;  %v572_v10 = vadd.f32 %v571_v27, %v483_v20 }
 0x18a   :  { %962 = vst [vmem:[#allocation8 + $0x50] sm:$0xff] %v887_v61  ;;  %v661_v11 = vadd.f32 %v660_v28, %v572_v10 }
 0x18c   :  { %v750_v62 = vadd.f32 %v749_v17, %v661_v11  ;;  %v752_v29 = vpop.f32.mrf.mxu0  ;;  %v841_v24 = vpop.f32.mrf.mxu1 }
 0x18e   :  { %v839_v25 = vadd.f32 %v838_v18, %v750_v62 }
 0x18f   :  { %v574_v31 = vpop.f32.mrf.mxu2  ;;  %v663_v37 = vpop.f32.mrf.mxu3 }
 0x190   :  { %v888_v38 = vadd.f32 %v1224_v2, %v839_v25  ;;  %v575_v39 = vadd.f32 %v574_v31, %v1151_v40 }
 0x192   :  { %963 = vst [vmem:[#allocation8 + $0x58] sm:$0xff] %v888_v38  ;;  %v664_v23 = vadd.f32 %v663_v37, %v575_v39 }
 0x194   :  { %v753_v26 = vadd.f32 %v752_v29, %v664_v23  ;;  %v755_v43 = vpop.f32.mrf.mxu0  ;;  %v844_v44 = vpop.f32.mrf.mxu1 }
 0x196   :  { %v842_v41 = vadd.f32 %v841_v24, %v753_v26 }
 0x197   :  { %v577_v45 = vpop.f32.mrf.mxu2  ;;  %v666_v46 = vpop.f32.mrf.mxu3 }
 0x198   :  { %v889_v50 = vadd.f32 %v1224_v2, %v842_v41  ;;  %v578_v51 = vadd.f32 %v577_v45, %v1157_v49 }
 0x19a   :  { %964 = vst [vmem:[#allocation8 + $0x60] sm:$0xff] %v889_v50  ;;  %v667_v6 = vadd.f32 %v666_v46, %v578_v51 }
 0x19c   :  { %v756_v33 = vadd.f32 %v755_v43, %v667_v6  ;;  %v758_v36 = vpop.f32.mrf.mxu0  ;;  %v847_v7 = vpop.f32.mrf.mxu1 }
 0x19e   :  { %v845_v54 = vadd.f32 %v844_v44, %v756_v33 }
 0x19f   :  { %v580_v55 = vpop.f32.mrf.mxu2  ;;  %v669_v40 = vpop.f32.mrf.mxu3 }
 0x1a0   :  { %v890_v57 = vadd.f32 %v1224_v2, %v845_v54  ;;  %v581_v59 = vadd.f32 %v580_v55, %v1163_v58 }
 0x1a2   :  { %965 = vst [vmem:[#allocation8 + $0x68] sm:$0xff] %v890_v57  ;;  %v670_v0 = vadd.f32 %v669_v40, %v581_v59 }
 0x1a4   :  { %v759_v1 = vadd.f32 %v758_v36, %v670_v0  ;;  %v761_v4 = vpop.f32.mrf.mxu0  ;;  %v850_v52 = vpop.f32.mrf.mxu1 }
 0x1a6   :  { %v848_v47 = vadd.f32 %v847_v7, %v759_v1 }
 0x1a7   :  { %v583_v48 = vpop.f32.mrf.mxu2  ;;  %v672_v49 = vpop.f32.mrf.mxu3 }
 0x1a8   :  { %v891_v53 = vadd.f32 %v1224_v2, %v848_v47  ;;  %v584_v8 = vadd.f32 %v583_v48, %v1169_v3 }
 0x1aa   :  { %966 = vst [vmem:[#allocation8 + $0x70] sm:$0xff] %v891_v53  ;;  %v673_v9 = vadd.f32 %v672_v49, %v584_v8 }
 0x1ac   :  { %v762_v34 = vadd.f32 %v761_v4, %v673_v9  ;;  %v764_v15 = vpop.f32.mrf.mxu0  ;;  %v853_v16 = vpop.f32.mrf.mxu1 }
 0x1ae   :  { %v851_v35 = vadd.f32 %v850_v52, %v762_v34 }
 0x1af   :  { %v586_v13 = vpop.f32.mrf.mxu2  ;;  %v675_v58 = vpop.f32.mrf.mxu3 }
 0x1b0   :  { %v892_v60 = vadd.f32 %v1224_v2, %v851_v35  ;;  %v587_v63 = vadd.f32 %v586_v13, %v1175_v12 }
 0x1b2   :  { %967 = vst [vmem:[#allocation8 + $0x78] sm:$0xff] %v892_v60  ;;  %v676_v14 = vadd.f32 %v675_v58, %v587_v63 }
 0x1b4   :  { %v765_v17 = vadd.f32 %v764_v15, %v676_v14  ;;  %v767_v18 = vpop.f32.mrf.mxu0  ;;  %v856_v20 = vpop.f32.mrf.mxu1 }
 0x1b6   :  { %v854_v22 = vadd.f32 %v853_v16, %v765_v17 }
 0x1b7   :  { %v589_v27 = vpop.f32.mrf.mxu2  ;;  %v678_v3 = vpop.f32.mrf.mxu3 }
 0x1b8   :  { %v893_v28 = vadd.f32 %v1224_v2, %v854_v22  ;;  %v590_v61 = vadd.f32 %v589_v27, %v1181_v21 }
 0x1ba   :  { %968 = vst [vmem:[#allocation8 + $0x80] sm:$0xff] %v893_v28  ;;  %v679_v10 = vadd.f32 %v678_v3, %v590_v61 }
 0x1bc   :  { %v768_v11 = vadd.f32 %v767_v18, %v679_v10  ;;  %v770_v62 = vpop.f32.mrf.mxu0  ;;  %v859_v29 = vpop.f32.mrf.mxu1 }
 0x1be   :  { %v857_v24 = vadd.f32 %v856_v20, %v768_v11 }
 0x1bf   :  { %v592_v25 = vpop.f32.mrf.mxu2  ;;  %v681_v12 = vpop.f32.mrf.mxu3 }
 0x1c0   :  { %v894_v31 = vadd.f32 %v1224_v2, %v857_v24  ;;  %v593_v37 = vadd.f32 %v592_v25, %v1187_v30 }
 0x1c2   :  { %969 = vst [vmem:[#allocation8 + $0x88] sm:$0xff] %v894_v31  ;;  %v682_v38 = vadd.f32 %v681_v12, %v593_v37 }
 0x1c4   :  { %v771_v39 = vadd.f32 %v770_v62, %v682_v38  ;;  %v773_v23 = vpop.f32.mrf.mxu0  ;;  %v862_v26 = vpop.f32.mrf.mxu1 }
 0x1c6   :  { %v860_v43 = vadd.f32 %v859_v29, %v771_v39 }
 0x1c7   :  { %v595_v44 = vpop.f32.mrf.mxu2  ;;  %v684_v21 = vpop.f32.mrf.mxu3 }
 0x1c8   :  { %v895_v41 = vadd.f32 %v1224_v2, %v860_v43  ;;  %v596_v45 = vadd.f32 %v595_v44, %v1193_v42 }
 0x1ca   :  { %970 = vst [vmem:[#allocation8 + $0x90] sm:$0xff] %v895_v41  ;;  %v685_v46 = vadd.f32 %v684_v21, %v596_v45 }
 0x1cc   :  { %v774_v50 = vadd.f32 %v773_v23, %v685_v46  ;;  %v776_v51 = vpop.f32.mrf.mxu0  ;;  %v865_v6 = vpop.f32.mrf.mxu1 }
 0x1ce   :  { %v863_v33 = vadd.f32 %v862_v26, %v774_v50 }
 0x1cf   :  { %v598_v36 = vpop.f32.mrf.mxu2  ;;  %v687_v30 = vpop.f32.mrf.mxu3 }
 0x1d0   :  { %v896_v7 = vadd.f32 %v1224_v2, %v863_v33  ;;  %v599_v54 = vadd.f32 %v598_v36, %v1199_v56 }
 0x1d2   :  { %971 = vst [vmem:[#allocation8 + $0x98] sm:$0xff] %v896_v7  ;;  %v688_v55 = vadd.f32 %v687_v30, %v599_v54 }
 0x1d4   :  { %v777_v40 = vadd.f32 %v776_v51, %v688_v55  ;;  %v779_v57 = vpop.f32.mrf.mxu0  ;;  %v868_v0 = vpop.f32.mrf.mxu1 }
 0x1d6   :  { %v866_v59 = vadd.f32 %v865_v6, %v777_v40 }
 0x1d7   :  { %v601_v1 = vpop.f32.mrf.mxu2  ;;  %v690_v42 = vpop.f32.mrf.mxu3 }
 0x1d8   :  { %v897_v4 = vadd.f32 %v1224_v2, %v866_v59  ;;  %v602_v52 = vadd.f32 %v601_v1, %v1205_v5 }
 0x1da   :  { %972 = vst [vmem:[#allocation8 + $0xa0] sm:$0xff] %v897_v4  ;;  %v691_v47 = vadd.f32 %v690_v42, %v602_v52 }
 0x1dc   :  { %v780_v48 = vadd.f32 %v779_v57, %v691_v47  ;;  %v782_v53 = vpop.f32.mrf.mxu0  ;;  %v871_v15 = vpop.f32.mrf.mxu1 }
 0x1de   :  { %v869_v49 = vadd.f32 %v868_v0, %v780_v48 }
 0x1df   :  { %v604_v8 = vpop.f32.mrf.mxu2  ;;  %v693_v9 = vpop.f32.mrf.mxu3 }
 0x1e0   :  { %v898_v56 = vadd.f32 %v1224_v2, %v869_v49  ;;  %v605_v34 = vadd.f32 %v604_v8, %v1211_v19 }
 0x1e2   :  { %973 = vst [vmem:[#allocation8 + $0xa8] sm:$0xff] %v898_v56  ;;  %v694_v16 = vadd.f32 %v693_v9, %v605_v34 }
 0x1e4   :  { %v783_v35 = vadd.f32 %v782_v53, %v694_v16  ;;  %v785_v14 = vpop.f32.mrf.mxu0  ;;  %v874_v18 = vpop.f32.mrf.mxu1 }
 0x1e6   :  { %v872_v13 = vadd.f32 %v871_v15, %v783_v35 }
 0x1e7   :  { %v607_v58 = vpop.f32.mrf.mxu2  ;;  %v696_v60 = vpop.f32.mrf.mxu3 }
 0x1e8   :  { %v899_v5 = vadd.f32 %v1224_v2, %v872_v13  ;;  %v608_v63 = vadd.f32 %v607_v58, %v1217_v32 }
 0x1ea   :  { %974 = vst [vmem:[#allocation8 + $0xb0] sm:$0xff] %v899_v5  ;;  %v697_v17 = vadd.f32 %v696_v60, %v608_v63 }
 0x1ec   :  { %v786_v20 = vadd.f32 %v785_v14, %v697_v17 }
 0x1ee   :  { %v875_v19 = vadd.f32 %v874_v18, %v786_v20 }
 0x1f0   :  { %v900_v22 = vadd.f32 %v1224_v2, %v875_v19 }
 0x1f2   :  { %975 = vst [vmem:[#allocation8 + $0xb8] sm:$0xff] %v900_v22 }
 0x1f3   :  { %988 = dma.vmem_to_hbm [thread:$0]  %s981_s24, 3072, %s983_s27, [#allocation5], %s1119_s28, %s1119_s28, %s1120_s29  }
 0x1f4   :  { %1112 = dma.done.wait [#allocation5], 3072  }
 0x1f5   :  { %1113 = vsyncadd [#allocation5], 4294964224 }
 0x1f6   :  { %993 = vsyncpa [#allocation4], 1 }
 0x1f7   :  { %994 = vsyncpa [#allocation7], 1 }
 0x1f8   :  { %995 = vsyncpa [#allocation5], 1 }

</bundles_post_ra>
